<compile_context>
chip_gen: v6e
topology: v6e:2x2x1
jax: 0.10.0
libtpu: 0.0.40
codegen_flags: <defaults>
</compile_context>

<pallas_src>
import functools

import jax
import jax.numpy as jnp
from jax.experimental import pallas as pl
from jax.experimental.pallas import tpu as pltpu

_LANES = 128
_ROW_ALIGN = 32    # sublane multiple valid for f32 / bf16 / int8 block rows
_CHUNK_ROWS = 64   # rows per inner accumulation chunk (bounds vreg pressure)


def _round_up(x, m):
    return ((x + m - 1) // m) * m


def _cdiv(a, b):
    return -(-a // b)


def _num_tensorcores():
    """TensorCores per chip: 2 on v7x, 1 on v5e/v6e (defensive fallback: 1)."""
    try:
        kind = jax.devices()[0].device_kind.lower()
    except Exception:
        return 1
    if "v5" in kind or "v6" in kind:
        return 1
    if "v7" in kind or "7x" in kind:
        return 2
    return 1


def _dve_partial_kernel(est_ref, s_ref, prob_ref, esum_ref, *,
                        epsilon, full_rows, tile_rows, steps, chunk_rows,
                        binary_s, mask_from_tile):
    p = pl.program_id(0)   # per-TensorCore split ("parallel")
    i = pl.program_id(1)   # sequential reduction steps within the split

    @pl.when(i == 0)
    def _init():
        prob_ref[...] = jnp.zeros_like(prob_ref)
        esum_ref[...] = jnp.zeros_like(esum_ref)

    t = p * steps + i                       # intended global tile index
    n_chunks = tile_rows // chunk_rows

    def col_accum(x):
        # Fold a (r, 128) f32 value into one (8, 128) per-(sublane, lane)
        # partial-sum vreg (pure VPU adds, no cross-lane work).
        r = x.shape[0]
        if r % 8 == 0:
            return x.reshape(-1, 8, _LANES).sum(axis=0)
        # Tiny full-array blocks whose row count is not a multiple of 8.
        col = x.sum(axis=0, keepdims=True)                        # (1, 128)
        row = jax.lax.broadcasted_iota(jnp.int32, (8, _LANES), 0)
        return jnp.where(row == 0, jnp.broadcast_to(col, (8, _LANES)),
                         jnp.float32(0.0))

    def chunk_sums(c, masked):
        r0 = c * chunk_rows
        if not isinstance(r0, int):
            r0 = pl.multiple_of(r0, chunk_rows)
        est = est_ref[pl.ds(r0, chunk_rows), :].astype(jnp.float32)
        s = s_ref[pl.ds(r0, chunk_rows), :]
        if binary_s:
            # s in {0,1} (bool/int input): one EUP log + one select per element.
            term = jnp.log(jnp.where(s > 0, est, 1.0 - est) + epsilon)
        else:
            sf = s.astype(jnp.float32)
            term = (sf * jnp.log(est + epsilon)
                    + (1.0 - sf) * jnp.log(1.0 - est + epsilon))
        if masked:
            # Row-based mask (no element-index i32 overflow); only compiled
            # into the boundary branch below.
            row = jax.lax.broadcasted_iota(jnp.int32, est.shape, 0)
            g_row = (t * tile_rows + c * chunk_rows) + row
            keep = g_row < full_rows
            zero = jnp.float32(0.0)
            term = jnp.where(keep, term, zero)
            est = jnp.where(keep, est, zero)
        return col_accum(term), col_accum(est)

    def accumulate(masked):
        if n_chunks == 1:
            dp, de = chunk_sums(0, masked)
        else:
            def body(c, carry):
                pa, ea = carry
                dp_c, de_c = chunk_sums(c, masked)
                return pa + dp_c, ea + de_c
            z = jnp.zeros((8, _LANES), jnp.float32)
            dp, de = jax.lax.fori_loop(0, n_chunks, body, (z, z), unroll=True)
        prob_ref[...] += dp
        esum_ref[...] += de

    if mask_from_tile is None:
        accumulate(masked=False)
    else:
        @pl.when(t < mask_from_tile)
        def _bulk():
            accumulate(masked=False)

        @pl.when(t >= mask_from_tile)
        def _boundary():
            accumulate(masked=True)


def dve_loss(est_data_value, s_input, reward_input, *,
             epsilon=1e-8, threshold=0.9,
             tile_rows=1024, n_split=None, input_buffering=None):
    """Pallas implementation of DVELoss.forward. Returns a scalar f32 array."""
    assert est_data_value.shape == s_input.shape, "est/s shapes must match"
    assert tile_rows >= _ROW_ALIGN and tile_rows % _ROW_ALIGN == 0

    total = int(est_data_value.size)

    # Binary fast path is auto-enabled only for bool/integer s (exact); float s
    # keeps the general two-log form. bool is passed as int8 (1 B/elem).
    s_dtype = s_input.dtype
    binary_s = (s_dtype == jnp.bool_) or jnp.issubdtype(s_dtype, jnp.integer)
    if s_dtype == jnp.bool_:
        s_input = s_input.astype(jnp.int8)

    est_flat = est_data_value.reshape(-1)   # row-major metadata reshape (free)
    s_flat = s_input.reshape(-1)

    full_rows = total // _LANES
    tail = total - full_rows * _LANES       # < 128 ragged sub-row elements

    # Ragged sub-row tail: tiny JAX epilogue (never a full-array pad/copy).
    if tail:
        est_t = est_flat[full_rows * _LANES:].astype(jnp.float32)
        s_t = s_flat[full_rows * _LANES:].astype(jnp.float32)
        prob_tail = jnp.sum(s_t * jnp.log(est_t + epsilon)
                            + (1.0 - s_t) * jnp.log(1.0 - est_t + epsilon))
        esum_tail = jnp.sum(est_t)
    else:
        prob_tail = jnp.float32(0.0)
        esum_tail = jnp.float32(0.0)

    if full_rows == 0:
        prob = prob_tail
        esum = esum_tail
    else:
        if tail:
            est2d = est_flat[:full_rows * _LANES].reshape(full_rows, _LANES)
            s2d = s_flat[:full_rows * _LANES].reshape(full_rows, _LANES)
        else:
            est2d = est_flat.reshape(full_rows, _LANES)   # zero-copy view
            s2d = s_flat.reshape(full_rows, _LANES)

        if full_rows >= _ROW_ALIGN:
            if n_split is None:
                n_split = _num_tensorcores()
            n_split = max(1, int(n_split))
            max_tile = (full_rows // _ROW_ALIGN) * _ROW_ALIGN
            per_split = _round_up(_cdiv(full_rows, n_split), _ROW_ALIGN)
            tile_rows_eff = max(_ROW_ALIGN, min(tile_rows, max_tile, per_split))
            chunk_rows_eff = (_CHUNK_ROWS if tile_rows_eff % _CHUNK_ROWS == 0
                              else _ROW_ALIGN)
            total_tiles = _cdiv(full_rows, tile_rows_eff)
            n_split_eff = max(1, min(n_split, total_tiles))
            steps = _cdiv(total_tiles, n_split_eff)
        else:
            # Tiny input: one block equal to the full array dims.
            tile_rows_eff = full_rows
            chunk_rows_eff = full_rows
            total_tiles = 1
            n_split_eff = 1
            steps = 1

        generated_tiles = n_split_eff * steps
        needs_mask = generated_tiles * tile_rows_eff > full_rows
        mask_from_tile = (full_rows // tile_rows_eff) if needs_mask else None
        last_tile = total_tiles - 1

        def in_map(p, i):
            # Clamp so over-generated split tiles re-read a valid tile; their
            # contribution is fully masked out in-kernel.
            return (jnp.minimum(p * steps + i, last_tile), 0)

        def make_in_spec():
            if input_buffering is None:
                return pl.BlockSpec((tile_rows_eff, _LANES), in_map)
            return pl.BlockSpec((tile_rows_eff, _LANES), in_map,
                                pipeline_mode=pl.Buffered(int(input_buffering)))

        kernel = functools.partial(
            _dve_partial_kernel,
            epsilon=float(epsilon),
            full_rows=full_rows,
            tile_rows=tile_rows_eff,
            steps=steps,
            chunk_rows=chunk_rows_eff,
            binary_s=binary_s,
            mask_from_tile=mask_from_tile,
        )

        prob_part, esum_part = pl.pallas_call(
            kernel,
            out_shape=(
                jax.ShapeDtypeStruct((n_split_eff * 8, _LANES), jnp.float32),
                jax.ShapeDtypeStruct((n_split_eff * 8, _LANES), jnp.float32),
            ),
            grid_spec=pltpu.PrefetchScalarGridSpec(
                num_scalar_prefetch=0,
                grid=(n_split_eff, steps),
                in_specs=[make_in_spec(), make_in_spec()],
                out_specs=(
                    pl.BlockSpec((8, _LANES), lambda p, i: (p, 0)),
                    pl.BlockSpec((8, _LANES), lambda p, i: (p, 0)),
                ),
            ),
            compiler_params=pltpu.CompilerParams(
                dimension_semantics=("parallel", "arbitrary"),
                vmem_limit_bytes=32 * 1024 * 1024,
            ),
        )(est2d, s2d)

        prob = jnp.sum(prob_part) + prob_tail
        esum = jnp.sum(esum_part) + esum_tail

    # Tiny scalar epilogue: mean + hinge penalty terms.
    mean_est = esum / jnp.float32(total)
    reward = jnp.asarray(reward_input, dtype=jnp.float32).reshape(())
    zero = jnp.float32(0.0)
    penalty = (jnp.maximum(mean_est - jnp.float32(threshold), zero)
               + jnp.maximum(jnp.float32(1.0 - threshold) - mean_est, zero))
    return -reward * prob + jnp.float32(1000.0) * penalty


def dve_loss_ref(est_data_value, s_input, reward_input, *,
                 epsilon=1e-8, threshold=0.9):
    """Pure-JAX reference mirroring the PyTorch forward."""
    est = est_data_value.astype(jnp.float32)
    s = s_input.astype(jnp.float32)
    prob = jnp.sum(s * jnp.log(est + epsilon)
                   + (1.0 - s) * jnp.log(1.0 - est + epsilon))
    mean_est = jnp.mean(est)
    zero = jnp.float32(0.0)
    return (-jnp.asarray(reward_input, jnp.float32) * prob
            + 1000.0 * (jnp.maximum(mean_est - threshold, zero)
                        + jnp.maximum(1.0 - threshold - mean_est, zero)))


if __name__ == "__main__":
    key = jax.random.PRNGKey(0)
    k1, k2, k3, k4, k5, k6, k7 = jax.random.split(key, 7)

    epsilon = 1e-8
    threshold = 0.9
    reward = jax.random.normal(k3, (), dtype=jnp.float32)

    # Case 1: small f32 est + float {0,1} s (general two-log path, single tile).
    est1 = jax.nn.sigmoid(jax.random.normal(k1, (64, 32), dtype=jnp.float32))
    s1 = (jax.random.uniform(k2, (64, 32)) > 0.5).astype(jnp.float32)
    out1 = jax.block_until_ready(
        dve_loss(est1, s1, reward, epsilon=epsilon, threshold=threshold))
    ref1 = dve_loss_ref(est1, s1, reward, epsilon=epsilon, threshold=threshold)
    assert jnp.allclose(out1, ref1, rtol=1e-4, atol=1e-4), (out1, ref1)

    # Case 2: larger f32 est + bool s (binary fast path with int8 s, multi-tile
    # grid, chunked fori_loop reduction, pl.when-gated boundary mask).
    est2 = jax.nn.sigmoid(jax.random.normal(k4, (300, 160), dtype=jnp.float32))
    s2 = jax.random.uniform(k5, (300, 160)) > 0.5
    out2 = jax.block_until_ready(
        dve_loss(est2, s2, reward, epsilon=epsilon, threshold=threshold))
    ref2 = dve_loss_ref(est2, s2, reward, epsilon=epsilon, threshold=threshold)
    assert jnp.allclose(out2, ref2, rtol=1e-4, atol=1e-4), (out2, ref2)

    # Case 3: ragged bf16 est + bool s (sub-row tail folded in by the tiny JAX
    # epilogue; full-array block whose row count is not a multiple of 8).
    est3 = jax.nn.sigmoid(jax.random.normal(k6, (37, 19))).astype(jnp.bfloat16)
    s3 = jax.random.uniform(k7, (37, 19)) > 0.5
    out3 = jax.block_until_ready(
        dve_loss(est3, s3, reward, epsilon=epsilon, threshold=threshold))
    ref3 = dve_loss_ref(est3, s3, reward, epsilon=epsilon, threshold=threshold)
    assert jnp.allclose(out3, ref3, rtol=1e-3, atol=1e-3), (out3, ref3)

    print("KERNEL_OK")
</pallas_src>

<mosaic_0001>
module attributes {stable_mosaic.version = 11 : i64} {
  func.func @_dve_partial_kernel(%arg0: i32, %arg1: i32, %arg2: memref<16x128xf32, #tpu.memory_space<vmem>>, %arg3: memref<16x128xf32, #tpu.memory_space<vmem>>, %arg4: memref<8x128xf32, #tpu.memory_space<vmem>>, %arg5: memref<8x128xf32, #tpu.memory_space<vmem>>) attributes {dimension_semantics = [#tpu.dimension_semantics<parallel>, #tpu.dimension_semantics<arbitrary>], iteration_bounds = array<i64: 1, 1>, scalar_prefetch = 0 : i64, scratch_operands = 0 : i64, tpu.core_type = #tpu.core_type<tc>, window_params = [{transform_indices = @transform_0, window_bounds = array<i64: 16, 128>}, {transform_indices = @transform_1, window_bounds = array<i64: 16, 128>}, {transform_indices = @transform_2, window_bounds = array<i64: 8, 128>}, {transform_indices = @transform_3, window_bounds = array<i64: 8, 128>}]} {
    %c0_i32 = arith.constant 0 : i32
    %0 = arith.cmpi eq, %arg1, %c0_i32 : i32
    %1 = arith.extui %0 : i1 to i32
    %c0_i32_0 = arith.constant 0 : i32
    %2 = arith.cmpi ne, %1, %c0_i32_0 : i32
    scf.if %2 {
      %cst_17 = arith.constant 0.000000e+00 : f32
      %28 = vector.broadcast %cst_17 : f32 to vector<8x128xf32>
      %c0_18 = arith.constant 0 : index
      %c0_19 = arith.constant 0 : index
      %29 = vector.load %arg4[%c0_18, %c0_19] : memref<8x128xf32, #tpu.memory_space<vmem>>, vector<8x128xf32>
      tpu.vector_store %arg4[%c0_18, %c0_19], %28 {strides = array<i32>} : memref<8x128xf32, #tpu.memory_space<vmem>>, vector<8x128xf32>,
      %cst_20 = arith.constant 0.000000e+00 : f32
      %30 = vector.broadcast %cst_20 : f32 to vector<8x128xf32>
      %c0_21 = arith.constant 0 : index
      %c0_22 = arith.constant 0 : index
      %31 = vector.load %arg5[%c0_21, %c0_22] : memref<8x128xf32, #tpu.memory_space<vmem>>, vector<8x128xf32>
      tpu.vector_store %arg5[%c0_21, %c0_22], %30 {strides = array<i32>} : memref<8x128xf32, #tpu.memory_space<vmem>>, vector<8x128xf32>,
    } else {
    }
    %c0 = arith.constant 0 : index
    %c0_1 = arith.constant 0 : index
    %3 = vector.load %arg2[%c0, %c0_1] : memref<16x128xf32, #tpu.memory_space<vmem>>, vector<16x128xf32>
    %c0_2 = arith.constant 0 : index
    %c0_3 = arith.constant 0 : index
    %4 = vector.load %arg3[%c0_2, %c0_3] : memref<16x128xf32, #tpu.memory_space<vmem>>, vector<16x128xf32>
    %cst = arith.constant 9.99999993E-9 : f32
    %5 = vector.broadcast %cst : f32 to vector<16x128xf32>
    %6 = arith.addf %3, %5 : vector<16x128xf32>
    %7 = math.log %6 : vector<16x128xf32>
    %8 = arith.mulf %4, %7 : vector<16x128xf32>
    %cst_4 = arith.constant 1.000000e+00 : f32
    %9 = vector.broadcast %cst_4 : f32 to vector<16x128xf32>
    %10 = arith.subf %9, %4 : vector<16x128xf32>
    %cst_5 = arith.constant 1.000000e+00 : f32
    %11 = vector.broadcast %cst_5 : f32 to vector<16x128xf32>
    %12 = arith.subf %11, %3 : vector<16x128xf32>
    %cst_6 = arith.constant 9.99999993E-9 : f32
    %13 = vector.broadcast %cst_6 : f32 to vector<16x128xf32>
    %14 = arith.addf %12, %13 : vector<16x128xf32>
    %15 = math.log %14 : vector<16x128xf32>
    %16 = arith.mulf %10, %15 : vector<16x128xf32>
    %17 = arith.addf %8, %16 : vector<16x128xf32>
    %18 = vector.shape_cast %17 : vector<16x128xf32> to vector<2x8x128xf32>
    %cst_7 = arith.constant dense<0.000000e+00> : vector<8x128xf32>
    %19 = vector.multi_reduction <add>, %18, %cst_7 [0] : vector<2x8x128xf32> to vector<8x128xf32>
    %20 = vector.shape_cast %3 : vector<16x128xf32> to vector<2x8x128xf32>
    %cst_8 = arith.constant dense<0.000000e+00> : vector<8x128xf32>
    %21 = vector.multi_reduction <add>, %20, %cst_8 [0] : vector<2x8x128xf32> to vector<8x128xf32>
    %c0_9 = arith.constant 0 : index
    %c0_10 = arith.constant 0 : index
    %22 = vector.load %arg4[%c0_9, %c0_10] : memref<8x128xf32, #tpu.memory_space<vmem>>, vector<8x128xf32>
    %23 = arith.addf %22, %19 : vector<8x128xf32>
    %c0_11 = arith.constant 0 : index
    %c0_12 = arith.constant 0 : index
    %24 = vector.load %arg4[%c0_11, %c0_12] : memref<8x128xf32, #tpu.memory_space<vmem>>, vector<8x128xf32>
    tpu.vector_store %arg4[%c0_11, %c0_12], %23 {strides = array<i32>} : memref<8x128xf32, #tpu.memory_space<vmem>>, vector<8x128xf32>,
    %c0_13 = arith.constant 0 : index
    %c0_14 = arith.constant 0 : index
    %25 = vector.load %arg5[%c0_13, %c0_14] : memref<8x128xf32, #tpu.memory_space<vmem>>, vector<8x128xf32>
    %26 = arith.addf %25, %21 : vector<8x128xf32>
    %c0_15 = arith.constant 0 : index
    %c0_16 = arith.constant 0 : index
    %27 = vector.load %arg5[%c0_15, %c0_16] : memref<8x128xf32, #tpu.memory_space<vmem>>, vector<8x128xf32>
    tpu.vector_store %arg5[%c0_15, %c0_16], %26 {strides = array<i32>} : memref<8x128xf32, #tpu.memory_space<vmem>>, vector<8x128xf32>,
    return
  }
  func.func @transform_0(%arg0: i32, %arg1: i32) -> (i32, i32) {
    %c1_i32 = arith.constant 1 : i32
    %0 = arith.muli %arg0, %c1_i32 : i32
    %1 = arith.addi %0, %arg1 : i32
    %c0_i32 = arith.constant 0 : i32
    %2 = arith.minsi %1, %c0_i32 : i32
    %c0_i32_0 = arith.constant 0 : i32
    %c0_i32_1 = arith.constant 0 : i32
    return %2, %c0_i32_0 : i32, i32
  }
  func.func @transform_1(%arg0: i32, %arg1: i32) -> (i32, i32) {
    %c1_i32 = arith.constant 1 : i32
    %0 = arith.muli %arg0, %c1_i32 : i32
    %1 = arith.addi %0, %arg1 : i32
    %c0_i32 = arith.constant 0 : i32
    %2 = arith.minsi %1, %c0_i32 : i32
    %c0_i32_0 = arith.constant 0 : i32
    %c0_i32_1 = arith.constant 0 : i32
    return %2, %c0_i32_0 : i32, i32
  }
  func.func @transform_2(%arg0: i32, %arg1: i32) -> (i32, i32) {
    %c0_i32 = arith.constant 0 : i32
    %c0_i32_0 = arith.constant 0 : i32
    return %arg0, %c0_i32 : i32, i32
  }
  func.func @transform_3(%arg0: i32, %arg1: i32) -> (i32, i32) {
    %c0_i32 = arith.constant 0 : i32
    %c0_i32_0 = arith.constant 0 : i32
    return %arg0, %c0_i32 : i32, i32
  }
}

</mosaic_0001>

<bundles_post_ra>
// kernel: tpu_custom_call.1
= control target key start
LH: loop header
LB: loop body
LE: loop exit
PB: predicated region body
PF: predicated region fallthrough
CT: control target
= control target key end

     0   :  { %9 = vsyncpa [#allocation3], 0  ;;  %s278_s0 = inlined_call_operand.hbm [shape: f32[16,128], index: 0, kind: input, shape index: {}]   ;;  %s279_s1 = inlined_call_operand.hbm [shape: f32[16,128], index: 1, kind: input, shape index: {}]   ;;  %s280_s2 = inlined_call_operand.hbm [shape: f32[8,128], index: 2, kind: output, shape index: {0}]   ;;  %s281_s3 = inlined_call_operand.hbm [shape: f32[8,128], index: 3, kind: output, shape index: {1}]  }
   0x1   :  { %10 = vsyncpa [#allocation6], 0 }
   0x2   :  { %11 = vsyncpa [#allocation4], 0 }
   0x3   :  { %12 = vsyncpa [#allocation9], 0  ;;  %s240_s12 = smov [#allocation2]  }
   0x4   :  { %s24_s13 = sshll.u32 %s240_s12, 4  ;;  %s25_s13 = int_to_ptr.vmem [resolvable:$true] %s24_s13 }
   0x5   :  { %s160_s14 = scalar_lea.vmem %s25_s13, 256  ;;  %p165_p1 = scmp.lt.s32.totalorder %s25_s13, %s25_s13 }
   0x6   :  { %p161_p0 = scmp.ne.s32.totalorder %s25_s13, %s160_s14  ;;  %p166_p2 = scmp.lt.s32.totalorder %s160_s14, %s160_s14 }
   0x8   :  { %p167_p3 = por %p166_p2, %p165_p1 }
   0xa   :  { %p168_p4 = pnand %p167_p3, %p161_p0 }
   0xc   :  { %171 = shalt.err (!%p168_p4)
}
   0xd   :  { %s241_s15 = smov 128   ;;  %s242_s16 = smov 8  }
   0xe   :  { %30 = dma.hbm_to_vmem [thread:$0]  %s278_s0, 256, %s25_s13, [#allocation3], %s241_s15, %s241_s15, %s242_s16  }
   0xf   :  { %s243_s19 = smov [#allocation5]  }
  0x10   :  { %s42_s20 = sshll.u32 %s243_s19, 4  ;;  %s43_s20 = int_to_ptr.vmem [resolvable:$true] %s42_s20 }
  0x11   :  { %s180_s21 = scalar_lea.vmem %s43_s20, 256  ;;  %p185_p6 = scmp.lt.s32.totalorder %s43_s20, %s43_s20 }
  0x12   :  { %p181_p5 = scmp.ne.s32.totalorder %s43_s20, %s180_s21  ;;  %p186_p7 = scmp.lt.s32.totalorder %s180_s21, %s180_s21 }
  0x14   :  { %p187_p8 = por %p186_p7, %p185_p6 }
  0x16   :  { %p188_p9 = pnand %p187_p8, %p181_p5 }
  0x18   :  { %191 = shalt.err (!%p188_p9)
}
  0x19   :  { %48 = dma.hbm_to_vmem [thread:$0]  %s279_s1, 256, %s43_s20, [#allocation6], %s241_s15, %s241_s15, %s242_s16  }
  0x1a   :  { %232 = dma.done.wait [#allocation3], 256  }
  0x1b   :  { %233 = vsyncadd [#allocation3], 4294967040 }
  0x1c   :  { %234 = dma.done.wait [#allocation6], 256  }
  0x1d   :  { %235 = vsyncadd [#allocation6], 4294967040  ;;  %v69_v0 = vld [vmem:[#allocation2] sm:$0xff]  ;;  %v70_v1 = vld [vmem:[#allocation2 + $0x8] sm:$0xff]  ;;  %s244_s0 = smov [#allocation8]  }
  0x1e   :  { %s119_s24 = sshll.u32 %s244_s0, 4  ;;  %v73_v2 = vadd.f32 1e-08, %v69_v0  ;;  %v74_v3 = vadd.f32 1e-08, %v70_v1  ;;  %v96_v4 = vadd.f32 %v70_v1, %v69_v0  ;;  %v83_v5 = vsub.f32 1.0, %v69_v0  ;;  %s120_s24 = int_to_ptr.vmem [resolvable:$true] %s119_s24 }
  0x1f   :  { %v84_v6 = vsub.f32 1.0, %v70_v1  ;;  %s192_s1 = scalar_lea.vmem %s120_s24, 128  ;;  %p197_p11 = scmp.lt.s32.totalorder %s120_s24, %s120_s24 }
  0x20   :  { %144 = vlog2.f32 %v73_v2  ;;  %v85_v7 = vadd.f32 1e-08, %v83_v5  ;;  %102 = vst [vmem:[#allocation8] sm:$0xff] %v96_v4  ;;  %p193_p10 = scmp.ne.s32.totalorder %s120_s24, %s192_s1  ;;  %p198_p12 = scmp.lt.s32.totalorder %s192_s1, %s192_s1 }
  0x21   :  { %146 = vlog2.f32 %v74_v3  ;;  %v86_v8 = vadd.f32 1e-08, %v84_v6 }
  0x22   :  { %148 = vlog2.f32 %v85_v7  ;;  %p199_p13 = por %p198_p12, %p197_p11 }
  0x24   :  { %p200_p0 = pnand %p199_p13, %p193_p10 }
  0x26   :  { %203 = shalt.err (!%p200_p0)
}
  0x27   :  { %122 = dma.vmem_to_hbm [thread:$0]  %s120_s24, 128, %s281_s3, [#allocation9]   ;;  %150 = vlog2.f32 %v86_v8  ;;  %v71_v9 = vld [vmem:[#allocation5] sm:$0xff]  ;;  %v72_v11 = vld [vmem:[#allocation5 + $0x8] sm:$0xff] }
  0x28   :  { %v81_v15 = vsub.f32 1.0, %v71_v9  ;;  %v82_v17 = vsub.f32 1.0, %v72_v11  ;;  %s245_s3 = smov [#allocation7]  }
  0x29   :  { %s109_s27 = sshll.u32 %s245_s3, 4  ;;  %s110_s27 = int_to_ptr.vmem [resolvable:$true] %s109_s27 }
  0x2a   :  { %s212_s28 = scalar_lea.vmem %s110_s27, 128  ;;  %p217_p2 = scmp.lt.s32.totalorder %s110_s27, %s110_s27 }
  0x2b   :  { %p213_p1 = scmp.ne.s32.totalorder %s110_s27, %s212_s28  ;;  %p218_p3 = scmp.lt.s32.totalorder %s212_s28, %s212_s28 }
  0x2d   :  { %v145_v10 = vpop.eup %144  ;;  %p219_p4 = por %p218_p3, %p217_p2 }
  0x2e   :  { %v147_v12 = vpop.eup %146  ;;  %v76_v13 = vmul.f32 0.6931472, %v145_v10 }
  0x2f   :  { %v78_v14 = vmul.f32 0.6931472, %v147_v12  ;;  %v149_v16 = vpop.eup %148  ;;  %p220_p5 = pnand %p219_p4, %p213_p1 }
  0x30   :  { %v79_v19 = vmul.f32 %v76_v13, %v71_v9  ;;  %v88_v20 = vmul.f32 0.6931472, %v149_v16 }
  0x31   :  { %v80_v21 = vmul.f32 %v78_v14, %v72_v11 }
  0x32   :  { %v91_v23 = vmul.f32 %v88_v20, %v81_v15 }
  0x34   :  { %v151_v18 = vpop.eup %150  ;;  %v93_v25 = vadd.f32 %v91_v23, %v79_v19 }
  0x35   :  { %v90_v22 = vmul.f32 0.6931472, %v151_v18 }
  0x37   :  { %v92_v24 = vmul.f32 %v90_v22, %v82_v17 }
  0x39   :  { %v94_v26 = vadd.f32 %v92_v24, %v80_v21 }
  0x3b   :  { %v95_v27 = vadd.f32 %v94_v26, %v93_v25 }
  0x3d   :  { %99 = vst [vmem:[#allocation7] sm:$0xff] %v95_v27 }
  0x3e   :  { %223 = shalt.err (!%p220_p5)
}
  0x3f   :  { %112 = dma.vmem_to_hbm [thread:$0]  %s110_s27, 128, %s280_s2, [#allocation4]  }
  0x40   :  { %236 = dma.done.wait [#allocation4], 128  }
  0x41   :  { %237 = vsyncadd [#allocation4], 4294967168 }
  0x42   :  { %238 = dma.done.wait [#allocation9], 128  }
  0x43   :  { %239 = vsyncadd [#allocation9], 4294967168 }
  0x44   :  { %129 = vsyncpa [#allocation3], 1 }
  0x45   :  { %130 = vsyncpa [#allocation6], 1 }
  0x46   :  { %131 = vsyncpa [#allocation4], 1 }
  0x47   :  { %132 = vsyncpa [#allocation9], 1 }

</bundles_post_ra>
